<compile_context>
chip_gen: v6e
topology: v6e:2x2x1
jax: 0.10.0
libtpu: 0.0.40
codegen_flags: <defaults>
</compile_context>

<pallas_src>
import jax
import jax.numpy as jnp
from jax.experimental import pallas as pl
from jax.experimental.pallas import tpu as pltpu


def perceptron_kernel(params_ref, xT_ref, o_ref):
    # params_ref: (D+1,) f32 in SMEM  -> [w_0, ..., w_{D-1}, b]
    # xT_ref:     (D, TB) f32 in VMEM -> batch on lanes (D pads only to 8 sublanes)
    # o_ref:      (1, TB) f32 in VMEM -> lane-dense output row
    d = xT_ref.shape[0]
    z = xT_ref[0:1, :] * params_ref[0]
    for k in range(1, d):                      # D is static (=2): unrolled per-lane FMAs
        z = z + xT_ref[k:k + 1, :] * params_ref[k]
    z = z + params_ref[d]                      # bias (SMEM scalar, VPU broadcast)
    # sigmoid(z) == 0.5 * (tanh(z/2) + 1): one EUP op per element, no exp + divide.
    o_ref[...] = (0.5 * (jnp.tanh(0.5 * z) + 1.0)).astype(o_ref.dtype)


def _vmem_budget_bytes():
    """Generation-aware VMEM budget: ~60% of physical capacity, capped at 80 MiB."""
    cap = 64 << 20                              # conservative default (v7x physical VMEM/TC)
    try:
        info = pltpu.get_tpu_info()
        cap = int(getattr(info, "vmem_capacity_bytes", cap))
    except Exception:
        pass                                    # keep conservative default
    return min(int(cap * 0.6), 80 << 20)


def _pick_batch_tile(B, D, vmem_budget_bytes):
    """Largest lane tile whose padded, double-buffered footprint fits the budget."""
    sub_x = ((max(D, 1) + 7) // 8) * 8          # x block sublanes after (8,128) padding
    per_lane_bytes = (sub_x + 8) * 4 * 2        # f32, (x block + out block), double-buffered
    fit = max(128, (vmem_budget_bytes // per_lane_bytes) // 128 * 128)
    tb = min(fit, 128 * 1024)                   # >=1 MiB useful x per step at D=2 (>> 0.35us step cost)
    if B >= 256:
        # guarantee >=2 grid steps so dimension_semantics=("parallel",) can use both v7x TCs
        half = (-(-((B + 1) // 2) // 128)) * 128
        tb = min(tb, half)
    b_ceil = -(-B // 128) * 128
    tb = min(tb, b_ceil)                        # never over-tile a small batch
    if B < 128:
        tb = B                                  # block == full lane extent (legal without 128-pad)
    return tb


def perceptron_forward(x, weight, bias):
    """x: (B, D) f32, weight: (1, D) f32 (PyTorch nn.Linear layout), bias: (1,) f32.
    Returns (B,) f32 == torch.sigmoid(fc1(x)).squeeze()."""
    B, D = x.shape
    # Layout plumbing: put the batch on the lane axis. (If the caller already stores x
    # as (D, B), this transpose disappears.)
    xT = jnp.transpose(x.astype(jnp.float32))                       # (D, B)
    params = jnp.concatenate([weight.reshape(-1).astype(jnp.float32),
                              bias.reshape(-1).astype(jnp.float32)])  # (D+1,) -> SMEM

    budget = _vmem_budget_bytes()
    TB = _pick_batch_tile(B, D, budget)
    G = pl.cdiv(B, TB)                          # partial last block allowed; edge write is masked

    out_row = pl.pallas_call(
        perceptron_kernel,
        out_shape=jax.ShapeDtypeStruct((1, B), jnp.float32),
        grid_spec=pltpu.PrefetchScalarGridSpec(
            num_scalar_prefetch=0,
            grid=(G,),
            in_specs=[
                pl.BlockSpec(memory_space=pltpu.MemorySpace.SMEM),   # [w..., b] scalars
                pl.BlockSpec((D, TB), lambda i: (0, i)),             # x^T: lane-dense batch tiles
            ],
            out_specs=pl.BlockSpec((1, TB), lambda i: (0, i)),       # lane-dense output row
        ),
        compiler_params=pltpu.CompilerParams(
            dimension_semantics=("parallel",),   # batch tiles independent (megacore-friendly)
            vmem_limit_bytes=budget,             # explicit scoped VMEM (v5e default is only 16 MiB)
        ),
    )(params, xT)

    return out_row[0]                            # squeeze() -> (batch,)


if __name__ == "__main__":
    input_dim = 2
    batch = 8

    key = jax.random.PRNGKey(0)
    kx, kw, kb, kx2 = jax.random.split(key, 4)

    # Deterministic parameter init (PyTorch nn.Linear default: U(-1/sqrt(fan_in), 1/sqrt(fan_in)))
    bound = 1.0 / jnp.sqrt(jnp.float32(input_dim))
    weight = jax.random.uniform(kw, (1, input_dim), jnp.float32, -bound, bound)
    bias = jax.random.uniform(kb, (1,), jnp.float32, -bound, bound)

    # Small case: single grid step, block == full array (no padding needed)
    x = jax.random.normal(kx, (batch, input_dim), jnp.float32)
    y = jax.block_until_ready(perceptron_forward(x, weight, bias))
    y_ref = jax.nn.sigmoid(x @ weight.T + bias).reshape(batch)
    assert y.shape == (batch,)
    assert jnp.allclose(y, y_ref, atol=1e-5, rtol=1e-5)

    # Multi-step case: B=300 -> TB=256, 2 parallel grid steps, partial (masked) last block
    batch2 = 300
    x2 = jax.random.normal(kx2, (batch2, input_dim), jnp.float32)
    y2 = jax.block_until_ready(perceptron_forward(x2, weight, bias))
    y2_ref = jax.nn.sigmoid(x2 @ weight.T + bias).reshape(batch2)
    assert y2.shape == (batch2,)
    assert jnp.allclose(y2, y2_ref, atol=1e-5, rtol=1e-5)

    print("KERNEL_OK")
</pallas_src>

<mosaic_0001>
module attributes {stable_mosaic.version = 11 : i64} {
  func.func @perceptron_kernel(%arg0: i32, %arg1: memref<3xf32, #tpu.memory_space<smem>>, %arg2: memref<2x8xf32, #tpu.memory_space<vmem>>, %arg3: memref<1x8xf32, #tpu.memory_space<vmem>>) attributes {dimension_semantics = [#tpu.dimension_semantics<parallel>], iteration_bounds = array<i64: 1>, scalar_prefetch = 0 : i64, scratch_operands = 0 : i64, tpu.core_type = #tpu.core_type<tc>, window_params = [{transform_indices = @transform_0, window_bounds = array<i64: 3>}, {transform_indices = @transform_1, window_bounds = array<i64: 2, 8>}, {transform_indices = @transform_2, window_bounds = array<i64: 1, 8>}]} {
    %c0 = arith.constant 0 : index
    %c0_0 = arith.constant 0 : index
    %0 = vector.load %arg2[%c0, %c0_0] : memref<2x8xf32, #tpu.memory_space<vmem>>, vector<1x8xf32>
    %c0_1 = arith.constant 0 : index
    %1 = memref.load %arg1[%c0_1] : memref<3xf32, #tpu.memory_space<smem>>
    %2 = vector.broadcast %1 : f32 to vector<1x8xf32>
    %3 = arith.mulf %0, %2 : vector<1x8xf32>
    %c1 = arith.constant 1 : index
    %c0_2 = arith.constant 0 : index
    %4 = vector.load %arg2[%c1, %c0_2] : memref<2x8xf32, #tpu.memory_space<vmem>>, vector<1x8xf32>
    %c1_3 = arith.constant 1 : index
    %5 = memref.load %arg1[%c1_3] : memref<3xf32, #tpu.memory_space<smem>>
    %6 = vector.broadcast %5 : f32 to vector<1x8xf32>
    %7 = arith.mulf %4, %6 : vector<1x8xf32>
    %8 = arith.addf %3, %7 : vector<1x8xf32>
    %c2 = arith.constant 2 : index
    %9 = memref.load %arg1[%c2] : memref<3xf32, #tpu.memory_space<smem>>
    %10 = vector.broadcast %9 : f32 to vector<1x8xf32>
    %11 = arith.addf %8, %10 : vector<1x8xf32>
    %cst = arith.constant 5.000000e-01 : f32
    %12 = vector.broadcast %cst : f32 to vector<1x8xf32>
    %13 = arith.mulf %12, %11 : vector<1x8xf32>
    %14 = math.tanh %13 : vector<1x8xf32>
    %cst_4 = arith.constant 1.000000e+00 : f32
    %15 = vector.broadcast %cst_4 : f32 to vector<1x8xf32>
    %16 = arith.addf %14, %15 : vector<1x8xf32>
    %cst_5 = arith.constant 5.000000e-01 : f32
    %17 = vector.broadcast %cst_5 : f32 to vector<1x8xf32>
    %18 = arith.mulf %17, %16 : vector<1x8xf32>
    %c0_6 = arith.constant 0 : index
    %c0_7 = arith.constant 0 : index
    %19 = vector.load %arg3[%c0_6, %c0_7] : memref<1x8xf32, #tpu.memory_space<vmem>>, vector<1x8xf32>
    tpu.vector_store %arg3[%c0_6, %c0_7], %18 {strides = array<i32>} : memref<1x8xf32, #tpu.memory_space<vmem>>, vector<1x8xf32>,
    return
  }
  func.func @transform_0(%arg0: i32) -> i32 {
    %c0_i32 = arith.constant 0 : i32
    %c0_i32_0 = arith.constant 0 : i32
    return %c0_i32 : i32
  }
  func.func @transform_1(%arg0: i32) -> (i32, i32) {
    %c0_i32 = arith.constant 0 : i32
    %c0_i32_0 = arith.constant 0 : i32
    return %c0_i32, %arg0 : i32, i32
  }
  func.func @transform_2(%arg0: i32) -> (i32, i32) {
    %c0_i32 = arith.constant 0 : i32
    %c0_i32_0 = arith.constant 0 : i32
    return %c0_i32, %arg0 : i32, i32
  }
}

</mosaic_0001>

<bundles_post_ra>
// kernel: tpu_custom_call.1
= control target key start
LH: loop header
LB: loop body
LE: loop exit
PB: predicated region body
PF: predicated region fallthrough
CT: control target
= control target key end

     0   :  { %7 = vsyncpa [#allocation5], 0  ;;  %s157_s0 = inlined_call_operand.hbm [shape: f32[3], index: 0, kind: input, shape index: {}]   ;;  %s158_s1 = inlined_call_operand.hbm [shape: f32[2,8], index: 1, kind: input, shape index: {}]   ;;  %s159_s2 = inlined_call_operand.hbm [shape: f32[1,8], index: 2, kind: output, shape index: {}]  }
   0x1   :  { %8 = vsyncpa [#allocation3], 0 }
   0x2   :  { %9 = vsyncpa [#allocation4], 0  ;;  %s130_s9 = smov [#allocation2]   ;;  %s131_s12 = smov [#allocation6]  }
   0x3   :  { %17 = dma.hbm_to_smem %s157_s0, 16, %s130_s9, [#allocation5]  }
   0x4   :  { %s24_s13 = sshll.u32 %s131_s12, 4  ;;  %s25_s13 = int_to_ptr.vmem [resolvable:$true] %s24_s13 }
   0x5   :  { %s92_s14 = scalar_lea.vmem %s25_s13, 32  ;;  %p97_p1 = scmp.lt.s32.totalorder %s25_s13, %s25_s13 }
   0x6   :  { %p93_p0 = scmp.ne.s32.totalorder %s25_s13, %s92_s14  ;;  %p98_p2 = scmp.lt.s32.totalorder %s92_s14, %s92_s14 }
   0x8   :  { %p99_p3 = por %p98_p2, %p97_p1 }
   0xa   :  { %p100_p4 = pnand %p99_p3, %p93_p0 }
   0xc   :  { %103 = shalt.err (!%p100_p4)
}
   0xd   :  { %27 = dma.hbm_to_vmem [thread:$0]  %s158_s1, 32, %s25_s13, [#allocation3]  }
   0xe   :  { %124 = dma.done.wait [#allocation5], 16  }
   0xf   :  { %125 = vsyncadd [#allocation5], 4294967280 }
  0x10   :  { %126 = dma.done.wait [#allocation3], 32  }
  0x11   :  { %127 = vsyncadd [#allocation3], 4294967264 }
  0x12   :  { %34 = sfence }
  0x13   :  { %s36_s0 = sld [smem:[#allocation2]]  ;;  %v35_v0 = vld [vmem:[#allocation6] sm:$0x1]  ;;  %v39_v1 = vld [vmem:[#allocation6 + $0x1] sm:$0x1]  ;;  %s132_s1 = smov [#allocation7]  }
  0x14   :  { %s69_s17 = sld [smem:[#allocation2 + $0x1]]  ;;  %s59_s19 = sshll.u32 %s132_s1, 4  ;;  %vm51_vm0 = vcmask 57344   ;;  %s60_s19 = int_to_ptr.vmem [resolvable:$true] %s59_s19 }
  0x15   :  { %s70_s18 = sld [smem:[#allocation2 + $0x2]]  ;;  %s104_s20 = scalar_lea.vmem %s60_s19, 16 }
  0x16   :  { %p105_p5 = scmp.ne.s32.totalorder %s60_s19, %s104_s20  ;;  %s108_s21 = scalar_lea.vmem %s60_s19, 32 }
  0x17   :  { %p109_p6 = scmp.lt.s32.totalorder %s60_s19, %s60_s19  ;;  %p110_p7 = scmp.lt.s32.totalorder %s108_s21, %s104_s20 }
  0x19   :  { %v37_v2 = vstv %s36_s0  ;;  %p111_p8 = por %p110_p7, %p109_p6 }
  0x1a   :  { %v38_v3 = vmul.f32 %v37_v2, %v35_v0  ;;  %v41_v4 = vstv %s69_s17 }
  0x1b   :  { %v42_v5 = vmul.f32 %v41_v4, %v39_v1  ;;  %v45_v6 = vstv %s70_s18  ;;  %p112_p9 = pnand %p111_p8, %p105_p5 }
  0x1d   :  { %v43_v7 = vadd.f32 %v42_v5, %v38_v3 }
  0x1f   :  { %v46_v8 = vadd.f32 %v45_v6, %v43_v7 }
  0x21   :  { %v47_v9 = vmul.f32 0.5, %v46_v8 }
  0x23   :  { %74 = vtanh.f32 %v47_v9 }
  0x30   :  { %v75_v10 = vpop.eup %74 }
  0x31   :  { %v49_v11 = vadd.f32 1.0, %v75_v10 }
  0x33   :  { %v50_v12 = vmul.f32 0.5, %v49_v11 }
  0x35   :  { %52 = vst.msk [vmem:[#allocation7] sm:$0x1] %vm51_vm0, %v50_v12 }
  0x36   :  { %115 = shalt.err (!%p112_p9)
}
  0x37   :  { %62 = dma.vmem_to_hbm [thread:$0]  %s60_s19, 16, %s159_s2, [#allocation4]  }
  0x38   :  { %128 = dma.done.wait [#allocation4], 16  }
  0x39   :  { %129 = vsyncadd [#allocation4], 4294967280 }
  0x3a   :  { %66 = vsyncpa [#allocation3], 1 }
  0x3b   :  { %67 = vsyncpa [#allocation4], 1 }
  0x3c   :  { %68 = vsyncpa [#allocation5], 1 }

</bundles_post_ra>
